<compile_context>
chip_gen: v6e
topology: v6e:2x2x1
jax: 0.10.0
libtpu: 0.0.40
codegen_flags: <defaults>
</compile_context>

<pallas_src>
import functools

import jax
import jax.numpy as jnp
from jax.experimental import pallas as pl
from jax.experimental.pallas import tpu as pltpu

LANES = 128
_SUBLANE_PAD = 32   # row padding multiple so f32/bf16/int8/bool all tile cleanly
_NUM_CORES = 2      # leading "parallel" grid axis (v7x has 2 TCs; harmless elsewhere)

# Padding sentinels (ragged tail): gt padded with 2.0 makes both gt==1 and
# gt<1 false, so padded elements contribute exactly 0 to every accumulator
# without any in-kernel validity mask.  pred padded with 0.5 keeps both logs
# finite (jnp.where would mask inf/NaN anyway, this just keeps things tidy).
_PRED_PAD = 0.5
_GT_PAD = 2.0
_MASK_PAD = 0


def _round_up(a, b):
    return ((a + b - 1) // b) * b


def _make_kernel(has_mask):
    """Kernel factory: masked / maskless variants (maskless drops an input)."""

    def kernel(pred_ref, gt_ref, *rest):
        if has_mask:
            mask_ref, out_ref = rest
        else:
            (out_ref,) = rest

        j = pl.program_id(1)             # tile (arbitrary / reduction) axis
        tr, ln = pred_ref.shape          # (tile_rows, 128), static

        # Per-core partial accumulators stay resident in VMEM across the
        # reduction axis; zero them once per core.
        @pl.when(j == 0)
        def _():
            out_ref[...] = jnp.zeros_like(out_ref)

        pred = pred_ref[...].astype(jnp.float32)
        gt = gt_ref[...].astype(jnp.float32)

        # Exact compares against 1.0 match the PyTorch reference (CornerNet
        # targets write exact 1.0 peaks).  Padded elements carry gt == 2.0 so
        # both masks are false there.
        pos_mask = gt == 1.0
        neg_mask = gt < 1.0
        if has_mask:
            neg_mask = jnp.logical_and(neg_mask, mask_ref[...] == 1)

        one_m_pred = 1.0 - pred
        pos_term = jnp.log(pred) * (one_m_pred * one_m_pred)
        one_m_gt_sq = (1.0 - gt) * (1.0 - gt)
        neg_term = (jnp.log(one_m_pred) * (pred * pred)
                    * (one_m_gt_sq * one_m_gt_sq))

        # where-select (not multiply-by-indicator) so masked-out lanes
        # contribute exactly 0 even if the unselected term is inf/NaN.
        pos_loss = jnp.where(pos_mask, pos_term, 0.0)
        neg_loss = jnp.where(neg_mask, neg_term, 0.0)
        pos_cnt = pos_mask.astype(jnp.float32)

        def part(x):
            # (tile_rows, 128) -> (8, 128): pure VPU vreg adds (no lane reduce).
            return x.reshape(tr // 8, 8, ln).sum(axis=0)

        out_ref[0, 0] += part(pos_loss)
        out_ref[0, 1] += part(neg_loss)
        out_ref[0, 2] += part(pos_cnt)

    return kernel


def _prep_2d(x, rows_final, pad_value):
    """Flatten to [rows_final, 128] in the array's native dtype.

    The reshape is free when the flattened size is already aligned; only the
    ragged case pays for a pad copy (with a sentinel pad value so padded
    elements are self-masking inside the kernel).
    """
    flat = x.reshape(-1)
    n = flat.shape[0]
    n_pad = rows_final * LANES
    if n_pad != n:
        flat = jnp.pad(flat, (0, n_pad - n), constant_values=pad_value)
    return flat.reshape(rows_final, LANES)


@functools.partial(jax.jit, static_argnames=("loss_weight", "tile_rows"))
def center_focal_loss(pred, target, mask=None, *, loss_weight=1.0,
                      tile_rows=4096):
    """Forward of CenterFocalLoss (reduction='none', weight=None).

    pred, target (and optional mask): [bs, c, h, w] NCHW, any float dtype
    (bf16 is streamed natively and computed in f32).  Returns a scalar.
    """
    assert tile_rows % _SUBLANE_PAD == 0 and tile_rows > 0

    n = pred.size
    rows = -(-n // LANES)
    tile = min(tile_rows, _round_up(rows, _SUBLANE_PAD))
    # Round rows up so every (core, tile) block is fully in bounds and the
    # tile count splits evenly across the parallel core axis.
    rows_final = _round_up(rows, tile * _NUM_CORES)
    n_tiles = rows_final // tile
    tiles_per_core = n_tiles // _NUM_CORES

    has_mask = mask is not None

    inputs = [_prep_2d(pred, rows_final, _PRED_PAD),
              _prep_2d(target, rows_final, _GT_PAD)]
    if has_mask:
        inputs.append(_prep_2d(mask, rows_final, _MASK_PAD))

    tile_spec = pl.BlockSpec(
        (tile, LANES), lambda c, j: (c * tiles_per_core + j, 0))
    out_spec = pl.BlockSpec(
        (1, 3, 8, LANES), lambda c, j: (c, 0, 0, 0))

    partials = pl.pallas_call(
        _make_kernel(has_mask),
        out_shape=jax.ShapeDtypeStruct((_NUM_CORES, 3, 8, LANES), jnp.float32),
        grid_spec=pltpu.PrefetchScalarGridSpec(
            num_scalar_prefetch=0,
            grid=(_NUM_CORES, tiles_per_core),
            in_specs=[tile_spec] * len(inputs),
            out_specs=out_spec,
        ),
        compiler_params=pltpu.CompilerParams(
            dimension_semantics=("parallel", "arbitrary"),
            vmem_limit_bytes=32 * 1024 * 1024),
    )(*inputs)

    # Tiny final reduction + scalar combination in plain JAX.
    sums = partials.sum(axis=(0, 2, 3))          # (3,)
    pos_sum, neg_sum, num_pos = sums[0], sums[1], sums[2]
    denom = jnp.maximum(num_pos, 1.0)
    loss = jnp.where(num_pos == 0.0, -neg_sum, -(pos_sum + neg_sum) / denom)
    return loss_weight * loss


def _reference(pred, gt, mask=None, loss_weight=1.0):
    pred = pred.astype(jnp.float32)
    gt = gt.astype(jnp.float32)
    pos_inds = (gt == 1.0).astype(jnp.float32)
    if mask is None:
        neg_inds = (gt < 1.0).astype(jnp.float32)
    else:
        neg_inds = (gt < 1.0).astype(jnp.float32) * (mask == 1).astype(jnp.float32)
    neg_weights = (1.0 - gt) ** 4
    pos_loss = (jnp.log(pred) * (1.0 - pred) ** 2 * pos_inds).sum()
    neg_loss = (jnp.log(1.0 - pred) * pred ** 2 * neg_weights * neg_inds).sum()
    num_pos = pos_inds.sum()
    loss = jnp.where(num_pos == 0.0, -neg_loss, -(pos_loss + neg_loss) / num_pos)
    return loss_weight * loss


if __name__ == "__main__":
    key = jax.random.PRNGKey(0)
    k1, k2, k3, k4 = jax.random.split(key, 4)

    bs, c, h, w = 2, 4, 16, 16  # NCHW, matching the PyTorch module
    # Predictions strictly inside (0, 1) (post-sigmoid heatmap).
    pred = jax.random.uniform(k1, (bs, c, h, w), jnp.float32, 0.05, 0.95)
    # Gaussian-style target heatmap in [0, 1) plus a few exact 1.0 peaks.
    target = jax.random.uniform(k2, (bs, c, h, w), jnp.float32, 0.0, 0.99)
    peak_rows = jax.random.randint(k3, (bs, c), 0, h)
    target = target.at[jnp.arange(bs)[:, None], jnp.arange(c)[None, :],
                       peak_rows, 3].set(1.0)

    # 1) unmasked, f32
    loss = jax.block_until_ready(center_focal_loss(pred, target))
    ref = _reference(pred, target)
    assert jnp.allclose(loss, ref, rtol=1e-5, atol=1e-5), (loss, ref)

    # 2) masked, f32, loss_weight != 1
    mask = (jax.random.uniform(k4, (bs, c, h, w)) > 0.3).astype(jnp.float32)
    loss_m = jax.block_until_ready(
        center_focal_loss(pred, target, mask=mask, loss_weight=2.0))
    ref_m = _reference(pred, target, mask=mask, loss_weight=2.0)
    assert jnp.allclose(loss_m, ref_m, rtol=1e-5, atol=1e-5), (loss_m, ref_m)

    # 3) bf16 inputs streamed natively (f32 compute in-kernel)
    pred_bf, target_bf = pred.astype(jnp.bfloat16), target.astype(jnp.bfloat16)
    loss_bf = jax.block_until_ready(center_focal_loss(pred_bf, target_bf))
    ref_bf = _reference(pred_bf, target_bf)
    assert jnp.allclose(loss_bf, ref_bf, rtol=1e-4, atol=1e-4), (loss_bf, ref_bf)

    # 4) ragged size (not a multiple of 128) exercises sentinel padding
    kp, kt = jax.random.split(jax.random.PRNGKey(1))
    pred_r = jax.random.uniform(kp, (2, 3, 7, 11), jnp.float32, 0.05, 0.95)
    target_r = jax.random.uniform(kt, (2, 3, 7, 11), jnp.float32, 0.0, 0.99)
    target_r = target_r.at[0, 0, 3, 4].set(1.0)
    loss_r = jax.block_until_ready(center_focal_loss(pred_r, target_r))
    ref_r = _reference(pred_r, target_r)
    assert jnp.allclose(loss_r, ref_r, rtol=1e-5, atol=1e-5), (loss_r, ref_r)

    # 5) zero positives exercises the num_pos == 0 branch
    target_z = jnp.clip(target, 0.0, 0.9)
    loss_z = jax.block_until_ready(center_focal_loss(pred, target_z))
    ref_z = _reference(pred, target_z)
    assert jnp.allclose(loss_z, ref_z, rtol=1e-5, atol=1e-5), (loss_z, ref_z)

    # 6) aligned multi-tile shape exercises the core-parallel tiled path
    ka, kb = jax.random.split(jax.random.PRNGKey(2))
    pred_l = jax.random.uniform(ka, (2, 4, 128, 128), jnp.float32, 0.05, 0.95)
    target_l = jax.random.uniform(kb, (2, 4, 128, 128), jnp.float32, 0.0, 0.99)
    target_l = target_l.at[:, :, 5, 7].set(1.0)
    loss_l = jax.block_until_ready(center_focal_loss(pred_l, target_l,
                                                     tile_rows=256))
    ref_l = _reference(pred_l, target_l)
    assert jnp.allclose(loss_l, ref_l, rtol=1e-5, atol=1e-5), (loss_l, ref_l)

    print("KERNEL_OK")
</pallas_src>

<mosaic_0001>
module attributes {stable_mosaic.version = 11 : i64} {
  func.func @kernel(%arg0: i32, %arg1: i32, %arg2: memref<32x128xf32, #tpu.memory_space<vmem>>, %arg3: memref<32x128xf32, #tpu.memory_space<vmem>>, %arg4: memref<1x3x8x128xf32, #tpu.memory_space<vmem>>) attributes {dimension_semantics = [#tpu.dimension_semantics<parallel>, #tpu.dimension_semantics<arbitrary>], iteration_bounds = array<i64: 2, 1>, scalar_prefetch = 0 : i64, scratch_operands = 0 : i64, tpu.core_type = #tpu.core_type<tc>, window_params = [{transform_indices = @transform_0, window_bounds = array<i64: 32, 128>}, {transform_indices = @transform_1, window_bounds = array<i64: 32, 128>}, {transform_indices = @transform_2, window_bounds = array<i64: 1, 3, 8, 128>}]} {
    %c0_i32 = arith.constant 0 : i32
    %0 = arith.cmpi eq, %arg1, %c0_i32 : i32
    %1 = arith.extui %0 : i1 to i32
    %c0_i32_0 = arith.constant 0 : i32
    %2 = arith.cmpi ne, %1, %c0_i32_0 : i32
    scf.if %2 {
      %cst_35 = arith.constant 0.000000e+00 : f32
      %54 = vector.broadcast %cst_35 : f32 to vector<1x3x8x128xf32>
      %c0_36 = arith.constant 0 : index
      %c0_37 = arith.constant 0 : index
      %c0_38 = arith.constant 0 : index
      %c0_39 = arith.constant 0 : index
      %55 = vector.load %arg4[%c0_36, %c0_37, %c0_38, %c0_39] : memref<1x3x8x128xf32, #tpu.memory_space<vmem>>, vector<1x3x8x128xf32>
      tpu.vector_store %arg4[%c0_36, %c0_37, %c0_38, %c0_39], %54 {strides = array<i32>} : memref<1x3x8x128xf32, #tpu.memory_space<vmem>>, vector<1x3x8x128xf32>,
    } else {
    }
    %c0 = arith.constant 0 : index
    %c0_1 = arith.constant 0 : index
    %3 = vector.load %arg2[%c0, %c0_1] : memref<32x128xf32, #tpu.memory_space<vmem>>, vector<32x128xf32>
    %c0_2 = arith.constant 0 : index
    %c0_3 = arith.constant 0 : index
    %4 = vector.load %arg3[%c0_2, %c0_3] : memref<32x128xf32, #tpu.memory_space<vmem>>, vector<32x128xf32>
    %cst = arith.constant 1.000000e+00 : f32
    %5 = vector.broadcast %cst : f32 to vector<32x128xf32>
    %6 = arith.cmpf oeq, %4, %5 : vector<32x128xf32>
    %cst_4 = arith.constant 1.000000e+00 : f32
    %7 = vector.broadcast %cst_4 : f32 to vector<32x128xf32>
    %8 = arith.cmpf olt, %4, %7 : vector<32x128xf32>
    %cst_5 = arith.constant 1.000000e+00 : f32
    %9 = vector.broadcast %cst_5 : f32 to vector<32x128xf32>
    %10 = arith.subf %9, %3 : vector<32x128xf32>
    %11 = math.log %3 : vector<32x128xf32>
    %12 = arith.mulf %10, %10 : vector<32x128xf32>
    %13 = arith.mulf %11, %12 : vector<32x128xf32>
    %cst_6 = arith.constant 1.000000e+00 : f32
    %14 = vector.broadcast %cst_6 : f32 to vector<32x128xf32>
    %15 = arith.subf %14, %4 : vector<32x128xf32>
    %cst_7 = arith.constant 1.000000e+00 : f32
    %16 = vector.broadcast %cst_7 : f32 to vector<32x128xf32>
    %17 = arith.subf %16, %4 : vector<32x128xf32>
    %18 = arith.mulf %15, %17 : vector<32x128xf32>
    %19 = math.log %10 : vector<32x128xf32>
    %20 = arith.mulf %3, %3 : vector<32x128xf32>
    %21 = arith.mulf %19, %20 : vector<32x128xf32>
    %22 = arith.mulf %18, %18 : vector<32x128xf32>
    %23 = arith.mulf %21, %22 : vector<32x128xf32>
    %cst_8 = arith.constant 0.000000e+00 : f32
    %24 = vector.broadcast %cst_8 : f32 to vector<32x128xf32>
    %25 = arith.select %6, %13, %24 : vector<32x128xi1>, vector<32x128xf32>
    %cst_9 = arith.constant 0.000000e+00 : f32
    %26 = vector.broadcast %cst_9 : f32 to vector<32x128xf32>
    %27 = arith.select %8, %23, %26 : vector<32x128xi1>, vector<32x128xf32>
    %28 = arith.extui %6 : vector<32x128xi1> to vector<32x128xi32>
    %29 = arith.sitofp %28 : vector<32x128xi32> to vector<32x128xf32>
    %c0_10 = arith.constant 0 : index
    %c0_11 = arith.constant 0 : index
    %c0_12 = arith.constant 0 : index
    %c0_13 = arith.constant 0 : index
    %30 = vector.load %arg4[%c0_10, %c0_11, %c0_12, %c0_13] : memref<1x3x8x128xf32, #tpu.memory_space<vmem>>, vector<1x1x8x128xf32>
    %31 = vector.shape_cast %30 : vector<1x1x8x128xf32> to vector<8x128xf32>
    %32 = vector.shape_cast %25 : vector<32x128xf32> to vector<4x8x128xf32>
    %cst_14 = arith.constant dense<0.000000e+00> : vector<8x128xf32>
    %33 = vector.multi_reduction <add>, %32, %cst_14 [0] : vector<4x8x128xf32> to vector<8x128xf32>
    %34 = arith.addf %31, %33 : vector<8x128xf32>
    %c0_15 = arith.constant 0 : index
    %c0_16 = arith.constant 0 : index
    %c0_17 = arith.constant 0 : index
    %c0_18 = arith.constant 0 : index
    %35 = vector.load %arg4[%c0_15, %c0_16, %c0_17, %c0_18] : memref<1x3x8x128xf32, #tpu.memory_space<vmem>>, vector<1x1x8x128xf32>
    %36 = vector.shape_cast %35 : vector<1x1x8x128xf32> to vector<8x128xf32>
    %37 = vector.shape_cast %34 : vector<8x128xf32> to vector<1x1x8x128xf32>
    tpu.vector_store %arg4[%c0_15, %c0_16, %c0_17, %c0_18], %37 {strides = array<i32>} : memref<1x3x8x128xf32, #tpu.memory_space<vmem>>, vector<1x1x8x128xf32>,
    %c0_19 = arith.constant 0 : index
    %c1 = arith.constant 1 : index
    %c0_20 = arith.constant 0 : index
    %c0_21 = arith.constant 0 : index
    %38 = vector.load %arg4[%c0_19, %c1, %c0_20, %c0_21] : memref<1x3x8x128xf32, #tpu.memory_space<vmem>>, vector<1x1x8x128xf32>
    %39 = vector.shape_cast %38 : vector<1x1x8x128xf32> to vector<8x128xf32>
    %40 = vector.shape_cast %27 : vector<32x128xf32> to vector<4x8x128xf32>
    %cst_22 = arith.constant dense<0.000000e+00> : vector<8x128xf32>
    %41 = vector.multi_reduction <add>, %40, %cst_22 [0] : vector<4x8x128xf32> to vector<8x128xf32>
    %42 = arith.addf %39, %41 : vector<8x128xf32>
    %c0_23 = arith.constant 0 : index
    %c1_24 = arith.constant 1 : index
    %c0_25 = arith.constant 0 : index
    %c0_26 = arith.constant 0 : index
    %43 = vector.load %arg4[%c0_23, %c1_24, %c0_25, %c0_26] : memref<1x3x8x128xf32, #tpu.memory_space<vmem>>, vector<1x1x8x128xf32>
    %44 = vector.shape_cast %43 : vector<1x1x8x128xf32> to vector<8x128xf32>
    %45 = vector.shape_cast %42 : vector<8x128xf32> to vector<1x1x8x128xf32>
    tpu.vector_store %arg4[%c0_23, %c1_24, %c0_25, %c0_26], %45 {strides = array<i32>} : memref<1x3x8x128xf32, #tpu.memory_space<vmem>>, vector<1x1x8x128xf32>,
    %c0_27 = arith.constant 0 : index
    %c2 = arith.constant 2 : index
    %c0_28 = arith.constant 0 : index
    %c0_29 = arith.constant 0 : index
    %46 = vector.load %arg4[%c0_27, %c2, %c0_28, %c0_29] : memref<1x3x8x128xf32, #tpu.memory_space<vmem>>, vector<1x1x8x128xf32>
    %47 = vector.shape_cast %46 : vector<1x1x8x128xf32> to vector<8x128xf32>
    %48 = vector.shape_cast %29 : vector<32x128xf32> to vector<4x8x128xf32>
    %cst_30 = arith.constant dense<0.000000e+00> : vector<8x128xf32>
    %49 = vector.multi_reduction <add>, %48, %cst_30 [0] : vector<4x8x128xf32> to vector<8x128xf32>
    %50 = arith.addf %47, %49 : vector<8x128xf32>
    %c0_31 = arith.constant 0 : index
    %c2_32 = arith.constant 2 : index
    %c0_33 = arith.constant 0 : index
    %c0_34 = arith.constant 0 : index
    %51 = vector.load %arg4[%c0_31, %c2_32, %c0_33, %c0_34] : memref<1x3x8x128xf32, #tpu.memory_space<vmem>>, vector<1x1x8x128xf32>
    %52 = vector.shape_cast %51 : vector<1x1x8x128xf32> to vector<8x128xf32>
    %53 = vector.shape_cast %50 : vector<8x128xf32> to vector<1x1x8x128xf32>
    tpu.vector_store %arg4[%c0_31, %c2_32, %c0_33, %c0_34], %53 {strides = array<i32>} : memref<1x3x8x128xf32, #tpu.memory_space<vmem>>, vector<1x1x8x128xf32>,
    return
  }
  func.func @transform_0(%arg0: i32, %arg1: i32) -> (i32, i32) {
    %c1_i32 = arith.constant 1 : i32
    %0 = arith.muli %arg0, %c1_i32 : i32
    %1 = arith.addi %0, %arg1 : i32
    %c0_i32 = arith.constant 0 : i32
    %c0_i32_0 = arith.constant 0 : i32
    return %1, %c0_i32 : i32, i32
  }
  func.func @transform_1(%arg0: i32, %arg1: i32) -> (i32, i32) {
    %c1_i32 = arith.constant 1 : i32
    %0 = arith.muli %arg0, %c1_i32 : i32
    %1 = arith.addi %0, %arg1 : i32
    %c0_i32 = arith.constant 0 : i32
    %c0_i32_0 = arith.constant 0 : i32
    return %1, %c0_i32 : i32, i32
  }
  func.func @transform_2(%arg0: i32, %arg1: i32) -> (i32, i32, i32, i32) {
    %c0_i32 = arith.constant 0 : i32
    %c0_i32_0 = arith.constant 0 : i32
    %c0_i32_1 = arith.constant 0 : i32
    %c0_i32_2 = arith.constant 0 : i32
    return %arg0, %c0_i32, %c0_i32_0, %c0_i32_1 : i32, i32, i32, i32
  }
}

</mosaic_0001>

<bundles_post_ra>
// kernel: center_focal_loss.1
= control target key start
LH: loop header
LB: loop body
LE: loop exit
PB: predicated region body
PF: predicated region fallthrough
CT: control target
= control target key end

     0   :  { %s482_s9 = smov 0   ;;  %s484_s10 = smov 0   ;;  %s569_s0 = inlined_call_operand.vmem [shape: f32[64,128], index: 0, kind: input, shape index: {}]   ;;  %s570_s1 = inlined_call_operand.vmem [shape: f32[64,128], index: 1, kind: input, shape index: {}]   ;;  %s571_s2 = inlined_call_operand.vmem [shape: f32[2,3,8,128], index: 2, kind: output, shape index: {}]  }
   0x1   :  { %s486_s11 = smov 0  }
   0x2 LB: > { %s24_s12 = sadd.s32 1, %s460_s10  ;;  %p384_p0 = scmp.ge.s32.totalorder %s464_s11, 1  ;;  %s464_s11 = sphi %s486_s11, %s12_s11   ;;  %s460_s10 = sphi %s484_s10, %s573_s10   ;;  %s456_s9 = sphi %s482_s9, %s572_s9  }
   0x3   : > { %p26_p1 = scmp.ge.s32.totalorder %s24_s12, 2  ;;  %p144_p2 = scmp.lt.s32.totalorder %s464_s11, 3 }
   0x5   : > { %s575_s12 = smov (%p26_p1, %s24_s12), 0  ;;  %p145_p3 = pnand %p384_p0, %p144_p2 }
   0x6   : > { %s385_s13 = sshll.u32 (!%p145_p3), %s456_s9, 2  ;;  %p189_p5 = scmp.lt.s32.totalorder (!%p145_p3), %s456_s9, 1 }
   0x7   : > { %148 = sbr.rel (%p145_p3) target bundleno = 49 (0x31), region = 28  ;;  %p175_p4 = scmp.lt.s32.totalorder (!%p145_p3), %s385_s13, 7 }
   0xc   : > { %s577_s13 = smov (!%p175_p4, %s385_s13), 7  ;;  %s579_s9 = smov (!%p189_p5, %s456_s9), 1  ;;  %v466_v13 = vmov 0.0  }
   0xd   : > { %s386_s14 = sshll.u32 %s577_s13, 3  ;;  %s400_s21 = smul.u32 24, %s579_s9 }
   0xe   : > { %s178_s17 = scalar_lea.vmem %s569_s0, %s386_s14  ;;  %s186_s20 = scalar_lea.vmem %s570_s1, %s386_s14 }
   0xf   : > { %v201_v0 = vld [vmem:[%s178_s17] sm:$0xff]  ;;  %v202_v1 = vld [vmem:[%s178_s17 + $0x8] sm:$0xff]  ;;  %v203_v2 = vld [vmem:[%s178_s17 + $0x10] sm:$0xff]  ;;  %s542_s24 = scalar_lea.vmem %s571_s2, %s400_s21 }
  0x10   : > { %v204_v3 = vld [vmem:[%s178_s17 + $0x18] sm:$0xff]  ;;  %v217_v4 = vsub.f32 1.0, %v201_v0  ;;  %426 = vlog2.f32 %v201_v0  ;;  %v218_v5 = vsub.f32 1.0, %v202_v1  ;;  %v219_v6 = vsub.f32 1.0, %v203_v2  ;;  %v510_v8 = vld [vmem:[%s186_s20] sm:$0xff]  ;;  %v512_v9 = vld [vmem:[%s186_s20 + $0x8] sm:$0xff] }
  0x11   : > { %428 = vlog2.f32 %v202_v1  ;;  %v220_v7 = vsub.f32 1.0, %v204_v3  ;;  %v514_v10 = vld [vmem:[%s186_s20 + $0x10] sm:$0xff]  ;;  %vm209_vm0 = vcmp.eq.f32.partialorder %v510_v8, 1.0  ;;  %vm210_vm1 = vcmp.eq.f32.partialorder %v512_v9, 1.0  ;;  %v522_v11 = vld [vmem:[%s186_s20 + $0x18] sm:$0xff] }
  0x12   : > { %430 = vlog2.f32 %v203_v2  ;;  %vm211_vm2 = vcmp.eq.f32.partialorder %v514_v10, 1.0  ;;  %vm212_vm3 = vcmp.eq.f32.partialorder %v522_v11, 1.0  ;;  %v237_v12 = vsub.f32 1.0, %v510_v8 }
  0x13   : > { %432 = vlog2.f32 %v204_v3  ;;  %v390_v14 = vsel %vm209_vm0, 1.0, %v466_v13  ;;  %v391_v15 = vsel %vm210_vm1, 1.0, %v466_v13  ;;  %v238_v16 = vsub.f32 1.0, %v512_v9 }
  0x14   : > { %434 = vlog2.f32 %v217_v4  ;;  %v392_v17 = vsel %vm211_vm2, 1.0, %v466_v13  ;;  %v239_v18 = vsub.f32 1.0, %v514_v10  ;;  %v240_v19 = vsub.f32 1.0, %v522_v11 }
  0x15   : > { %436 = vlog2.f32 %v218_v5  ;;  %v300_v20 = vadd.f32 %v391_v15, %v390_v14  ;;  %v229_v21 = vmul.f32 %v217_v4, %v217_v4  ;;  %v230_v22 = vmul.f32 %v218_v5, %v218_v5 }
  0x16   : > { %438 = vlog2.f32 %v219_v6  ;;  %v231_v23 = vmul.f32 %v219_v6, %v219_v6  ;;  %v393_v24 = vsel %vm212_vm3, 1.0, %v466_v13  ;;  %v232_v26 = vmul.f32 %v220_v7, %v220_v7 }
  0x17   : > { %440 = vlog2.f32 %v220_v7  ;;  %vm213_vm4 = vcmp.lt.f32.partialorder %v510_v8, 1.0  ;;  %v241_v27 = vmul.f32 %v237_v12, %v237_v12  ;;  %v301_v28 = vadd.f32 %v392_v17, %v300_v20 }
  0x18   : > { %v242_v31 = vmul.f32 %v238_v16, %v238_v16  ;;  %v253_v32 = vmul.f32 %v201_v0, %v201_v0  ;;  %v254_v33 = vmul.f32 %v202_v1, %v202_v1  ;;  %v243_v36 = vmul.f32 %v239_v18, %v239_v18 }
  0x19   : > { %v244_v37 = vmul.f32 %v240_v19, %v240_v19  ;;  %v302_v38 = vadd.f32 %v393_v24, %v301_v28  ;;  %v255_v42 = vmul.f32 %v203_v2, %v203_v2  ;;  %v256_v43 = vmul.f32 %v204_v3, %v204_v3 }
  0x1a   : > { %v261_v47 = vmul.f32 %v241_v27, %v241_v27  ;;  %v262_v52 = vmul.f32 %v242_v31, %v242_v31  ;;  %v263_v57 = vmul.f32 %v243_v36, %v243_v36  ;;  %vm214_vm5 = vcmp.lt.f32.partialorder %v512_v9, 1.0 }
  0x1b   : > { %397 = vst [vmem:[%s542_s24 + $0x10] sm:$0xff] %v302_v38  ;;  %v264_v2 = vmul.f32 %v244_v37, %v244_v37  ;;  %vm215_vm6 = vcmp.lt.f32.partialorder %v514_v10, 1.0  ;;  %vm216_vm7 = vcmp.lt.f32.partialorder %v522_v11, 1.0 }
  0x1d   : > { %v427_v25 = vpop.eup %426 }
  0x1e   : > { %v429_v29 = vpop.eup %428  ;;  %v222_v30 = vmul.f32 0.6931472, %v427_v25 }
  0x1f   : > { %v431_v34 = vpop.eup %430  ;;  %v224_v35 = vmul.f32 0.6931472, %v429_v29 }
  0x20   : > { %v433_v39 = vpop.eup %432  ;;  %v226_v40 = vmul.f32 0.6931472, %v431_v34  ;;  %v233_v41 = vmul.f32 %v229_v21, %v222_v30 }
  0x21   : > { %v435_v44 = vpop.eup %434  ;;  %v228_v45 = vmul.f32 0.6931472, %v433_v39  ;;  %v234_v46 = vmul.f32 %v230_v22, %v224_v35 }
  0x22   : > { %v437_v48 = vpop.eup %436  ;;  %v235_v49 = vmul.f32 %v231_v23, %v226_v40  ;;  %v269_v50 = vsel %vm209_vm0, %v233_v41, 0.0  ;;  %v246_v51 = vmul.f32 0.6931472, %v435_v44 }
  0x23   : > { %v439_v53 = vpop.eup %438  ;;  %v236_v54 = vmul.f32 %v232_v26, %v228_v45  ;;  %v270_v55 = vsel %vm210_vm1, %v234_v46, 0.0  ;;  %v248_v56 = vmul.f32 0.6931472, %v437_v48 }
  0x24   : > { %v441_v58 = vpop.eup %440  ;;  %v271_v59 = vsel %vm211_vm2, %v235_v49, 0.0  ;;  %v286_v60 = vadd.f32 %v270_v55, %v269_v50  ;;  %v250_v61 = vmul.f32 0.6931472, %v439_v53  ;;  %v257_v62 = vmul.f32 %v253_v32, %v246_v51 }
  0x25   : > { %v272_v63 = vsel %vm212_vm3, %v236_v54, 0.0  ;;  %v252_v0 = vmul.f32 0.6931472, %v441_v58  ;;  %v258_v1 = vmul.f32 %v254_v33, %v248_v56 }
  0x26   : > { %v287_v3 = vadd.f32 %v286_v60, %v271_v59  ;;  %v259_v4 = vmul.f32 %v255_v42, %v250_v61  ;;  %v265_v5 = vmul.f32 %v261_v47, %v257_v62 }
  0x27   : > { %v260_v6 = vmul.f32 %v256_v43, %v252_v0  ;;  %v266_v7 = vmul.f32 %v262_v52, %v258_v1 }
  0x28   : > { %v288_v12 = vadd.f32 %v287_v3, %v272_v63  ;;  %v267_v13 = vmul.f32 %v263_v57, %v259_v4  ;;  %v273_v14 = vsel %vm213_vm4, %v265_v5, 0.0 }
  0x29   : > { %v268_v15 = vmul.f32 %v264_v2, %v260_v6  ;;  %v274_v16 = vsel %vm214_vm5, %v266_v7, 0.0 }
  0x2a   : > { %v275_v17 = vsel %vm215_vm6, %v267_v13, 0.0  ;;  %v293_v18 = vadd.f32 %v274_v16, %v273_v14  ;;  %290 = vst [vmem:[%s542_s24] sm:$0xff] %v288_v12 }
  0x2b   : > { %v276_v19 = vsel %vm216_vm7, %v268_v15, 0.0 }
  0x2c   : > { %v294_v9 = vadd.f32 %v293_v18, %v275_v17 }
  0x2e   : > { %v295_v20 = vadd.f32 %v294_v9, %v276_v19 }
  0x30   : > { %395 = vst [vmem:[%s542_s24 + $0x8] sm:$0xff] %v295_v20 }
  0x31 PF: > { %s12_s11 = sadd.s32 1, %s464_s11   ;;  %s572_s9 = smov %s460_s10 }
  0x32   : > { %p9_p6 = scmp.ge.s32.totalorder %s12_s11, 4   ;;  %s573_s10 = smov %s575_s12 }
  0x34   :  { %11 = sbr.rel (!%p9_p6) target bundleno = 2 (0x2), region = 67 }

</bundles_post_ra>
